<compile_context>
chip_gen: v6e
topology: v6e:2x2x1
jax: 0.10.0
libtpu: 0.0.40
codegen_flags: <defaults>
</compile_context>

<pallas_src>
import functools

import jax
import jax.numpy as jnp
from jax.experimental import pallas as pl
from jax.experimental.pallas import tpu as pltpu

_LN_EPS = 1e-5                      # nn.LayerNorm default
_VMEM_LIMIT = 32 * 1024 * 1024      # explicit scoped-VMEM budget (safe on v5e/v6e/v7x)


def _round_up(x, m):
    return (x + m - 1) // m * m


def _pad_axis(a, axis, target):
    pad = target - a.shape[axis]
    if pad == 0:
        return a
    widths = [(0, 0)] * a.ndim
    widths[axis] = (0, pad)
    return jnp.pad(a, widths)


# ----------------- K1: fused LayerNorm -> Linear [-> GELU] -----------------

def _ln_linear_kernel(x_ref, g_ref, b_ref, w_ref, bias_ref, o_ref, y_ref, *, eps, gelu):
    # LayerNorm (f32 math) computed once per row block, cached in bf16 scratch and reused
    # for every output-column tile j > 0.
    @pl.when(pl.program_id(1) == 0)
    def _():
        x = x_ref[...].astype(jnp.float32)                       # (TM, D)
        mu = jnp.mean(x, axis=-1, keepdims=True)
        xc = x - mu
        var = jnp.mean(xc * xc, axis=-1, keepdims=True)
        y = xc * jax.lax.rsqrt(var + eps)
        y = y * g_ref[...] + b_ref[...]                          # affine, (1, D) broadcast
        y_ref[...] = y.astype(y_ref.dtype)                       # bf16 cache

    out = jnp.dot(y_ref[...], w_ref[...],                        # bf16 x bf16 -> f32 on MXU
                  preferred_element_type=jnp.float32)
    out = out + bias_ref[...]
    if gelu:
        # TODO(synk): nn.GELU default is the exact erf-based GELU; tanh approximation used
        # here (erf lowering on Mosaic is not guaranteed). Max elementwise diff ~1e-3.
        c = 0.7978845608028654  # sqrt(2/pi)
        out = 0.5 * out * (1.0 + jnp.tanh(c * (out + 0.044715 * out * out * out)))
    o_ref[...] = out.astype(o_ref.dtype)


def _ln_linear(x, gamma, beta, w, bias, *, gelu=False, out_dtype=None,
               eps=_LN_EPS, tm=512, tn=512):
    """out = [GELU](LayerNorm(x) * gamma + beta) @ w + bias ; x:(M,D) f32, w:(D,N) bf16."""
    M, D = x.shape
    N = w.shape[1]
    out_dtype = x.dtype if out_dtype is None else out_dtype
    TM = M if M <= tm else tm            # full-dim block OK; otherwise multiple of 8
    TN = N if N <= tn else tn            # 512 is a multiple of 128 -> lane-dense stores
    Mp, Np = _round_up(M, TM), _round_up(N, TN)
    # Padding only triggers for shapes that don't divide the tile (none in typical configs);
    # padded rows are all-zero -> LN yields the bias row, harmless, sliced off below.
    xp = _pad_axis(x, 0, Mp)
    wp = _pad_axis(w, 1, Np)
    biasp = _pad_axis(bias, 1, Np)

    out = pl.pallas_call(
        functools.partial(_ln_linear_kernel, eps=eps, gelu=gelu),
        out_shape=jax.ShapeDtypeStruct((Mp, Np), out_dtype),
        grid=(Mp // TM, Np // TN),
        in_specs=[
            pl.BlockSpec((TM, D), lambda i, j: (i, 0)),
            pl.BlockSpec((1, D), lambda i, j: (0, 0)),
            pl.BlockSpec((1, D), lambda i, j: (0, 0)),
            pl.BlockSpec((D, TN), lambda i, j: (0, j)),
            pl.BlockSpec((1, TN), lambda i, j: (0, j)),
        ],
        out_specs=pl.BlockSpec((TM, TN), lambda i, j: (i, j)),
        scratch_shapes=[pltpu.VMEM((TM, D), jnp.bfloat16)],       # LN cache
        compiler_params=pltpu.CompilerParams(
            dimension_semantics=("parallel", "arbitrary"),        # scratch carried across j
            vmem_limit_bytes=_VMEM_LIMIT),
    )(xp, gamma, beta, wp, biasp)
    if Mp == M and Np == N:
        return out
    return out[:M, :N]


# ----------------- K3: fused Linear -> +bias -> +residual -----------------

def _linear_residual_kernel(x_ref, w_ref, bias_ref, res_ref, o_ref):
    out = jnp.dot(x_ref[...], w_ref[...], preferred_element_type=jnp.float32)
    out = out + bias_ref[...] + res_ref[...].astype(jnp.float32)
    o_ref[...] = out.astype(o_ref.dtype)


def _linear_residual(x, w, bias, res, *, tm=512, tn=512):
    """out = res + x @ w + bias ; x:(M,K) bf16, w:(K,N) bf16, res:(M,N) f32."""
    M, K = x.shape
    N = w.shape[1]
    TM = M if M <= tm else tm
    TN = N if N <= tn else tn
    Mp, Np = _round_up(M, TM), _round_up(N, TN)
    xp = _pad_axis(x, 0, Mp)
    wp = _pad_axis(w, 1, Np)
    biasp = _pad_axis(bias, 1, Np)
    resp = _pad_axis(_pad_axis(res, 0, Mp), 1, Np)

    out = pl.pallas_call(
        _linear_residual_kernel,
        out_shape=jax.ShapeDtypeStruct((Mp, Np), res.dtype),
        grid=(Mp // TM, Np // TN),
        in_specs=[
            pl.BlockSpec((TM, K), lambda i, j: (i, 0)),
            pl.BlockSpec((K, TN), lambda i, j: (0, j)),
            pl.BlockSpec((1, TN), lambda i, j: (0, j)),
            pl.BlockSpec((TM, TN), lambda i, j: (i, j)),
        ],
        out_specs=pl.BlockSpec((TM, TN), lambda i, j: (i, j)),
        compiler_params=pltpu.CompilerParams(
            dimension_semantics=("parallel", "parallel"),
            vmem_limit_bytes=_VMEM_LIMIT),
    )(xp, wp, biasp, resp)
    if Mp == M and Np == N:
        return out
    return out[:M, :N]


# ----------------- K2: attention, one batch per grid step, all heads inside -----------------

def _attn_kernel(qkv_ref, o_ref, *, nhead, scale):
    # qkv_ref block: (1, S, 3D) with columns [q | k | v], each D = nhead * Dh.
    S = qkv_ref.shape[1]
    D = qkv_ref.shape[2] // 3
    Dh = D // nhead
    qkv = qkv_ref[0]                                              # (S, 3D) bf16
    outs = []
    for h in range(nhead):                                        # static unroll over heads
        q = qkv[:, h * Dh:(h + 1) * Dh]
        k = qkv[:, D + h * Dh:D + (h + 1) * Dh]
        v = qkv[:, 2 * D + h * Dh:2 * D + (h + 1) * Dh]
        # q @ k^T without materializing a transpose; f32 accumulation.
        s = jax.lax.dot_general(q, k, (((1,), (1,)), ((), ())),
                                preferred_element_type=jnp.float32) * scale   # (S, S)
        m = jnp.max(s, axis=-1, keepdims=True)
        p = jnp.exp(s - m)
        l = jnp.sum(p, axis=-1, keepdims=True)
        o = jnp.dot(p.astype(v.dtype), v, preferred_element_type=jnp.float32)  # (S, Dh)
        o = o * pl.reciprocal(l, approx=True)                     # EUP reciprocal, no S*S divide
        outs.append(o)
    o_ref[0] = jnp.concatenate(outs, axis=-1).astype(o_ref.dtype)  # lane-dense (S, D) store


def _attention(qkv3, nhead):
    """qkv3: (B, S, 3D) bf16  ->  (B, S, D) bf16."""
    # TODO(synk): for long sequences replace with a flash-style KV-tiled online-softmax loop;
    # the full (S, S) f32 score matrix here is only valid for short S (esp. on v7x's 64 MiB VMEM).
    B, S, D3 = qkv3.shape
    D = D3 // 3
    Dh = D // nhead
    scale = 1.0 / (Dh ** 0.5)
    return pl.pallas_call(
        functools.partial(_attn_kernel, nhead=nhead, scale=scale),
        out_shape=jax.ShapeDtypeStruct((B, S, D), qkv3.dtype),
        grid=(B,),
        in_specs=[pl.BlockSpec((1, S, D3), lambda b: (b, 0, 0))],
        out_specs=pl.BlockSpec((1, S, D), lambda b: (b, 0, 0)),
        compiler_params=pltpu.CompilerParams(
            dimension_semantics=("parallel",),
            vmem_limit_bytes=_VMEM_LIMIT),
    )(qkv3)


# ----------------- Full layer forward -----------------

def stable_transformer_layer(src, params, nhead):
    """src: (S, B, D) — seq-first, matching nn.MultiheadAttention(batch_first=False).

    Weights are stored transposed (in_features, out_features) in bf16; LN params / biases f32.
    Dropout layers are identity (inference). only_last_state=False; masks=None.
    """
    S, B, D = src.shape
    H = nhead
    assert D % H == 0
    M = B * S

    # Batch-major internally: one transpose in / one out; every intermediate then reshapes
    # for free, so no per-head HBM permutes around attention.
    xb = jnp.transpose(src, (1, 0, 2)).reshape(M, D)                       # (B*S, D) f32

    # norm1 fused with the QKV in-projection.
    qkv = _ln_linear(xb, params["ln1_g"], params["ln1_b"],
                     params["w_qkv"], params["b_qkv"],
                     gelu=False, out_dtype=jnp.bfloat16)                   # (M, 3D) bf16

    attn = _attention(qkv.reshape(B, S, 3 * D), H)                         # (B, S, D) bf16

    # out_proj fused with the first residual add (dropout1 == identity).
    src2 = _linear_residual(attn.reshape(M, D),
                            params["w_o"], params["b_o"], xb)              # (M, D) f32

    # norm2 fused with linear1 and GELU (dropout == identity).
    h = _ln_linear(src2, params["ln2_g"], params["ln2_b"],
                   params["w_1"], params["b_1"],
                   gelu=True, out_dtype=jnp.bfloat16)                      # (M, F) bf16

    # linear2 fused with the second residual add (dropout2 == identity).
    out = _linear_residual(h, params["w_2"], params["b_2"], src2)          # (M, D) f32
    return jnp.transpose(out.reshape(B, S, D), (1, 0, 2))                  # (S, B, D)


# ----------------- Pure-JAX reference (same math, no Pallas) -----------------

def _reference(src, params, nhead):
    S, B, D = src.shape
    H = nhead
    Dh = D // H

    def f32(a):
        return a.astype(jnp.float32)

    def ln(x, g, b):
        mu = x.mean(-1, keepdims=True)
        var = ((x - mu) ** 2).mean(-1, keepdims=True)
        return (x - mu) / jnp.sqrt(var + _LN_EPS) * g + b

    def gelu_tanh(x):
        c = 0.7978845608028654
        return 0.5 * x * (1.0 + jnp.tanh(c * (x + 0.044715 * x ** 3)))

    x2 = ln(src, params["ln1_g"], params["ln1_b"])
    qkv = x2 @ f32(params["w_qkv"]) + params["b_qkv"]
    q, k, v = jnp.split(qkv, 3, axis=-1)

    def heads(t):  # (S,B,D) -> (B,H,S,Dh)
        return t.reshape(S, B, H, Dh).transpose(1, 2, 0, 3)

    qh, kh, vh = heads(q), heads(k), heads(v)
    scores = (qh @ jnp.swapaxes(kh, -1, -2)) / jnp.sqrt(jnp.float32(Dh))
    p = jax.nn.softmax(scores, axis=-1)
    a = (p @ vh).transpose(2, 0, 1, 3).reshape(S, B, D)
    src2 = src + a @ f32(params["w_o"]) + params["b_o"]
    x3 = ln(src2, params["ln2_g"], params["ln2_b"])
    hh = gelu_tanh(x3 @ f32(params["w_1"]) + params["b_1"])
    return src2 + hh @ f32(params["w_2"]) + params["b_2"]


if __name__ == "__main__":
    key = jax.random.PRNGKey(0)
    ks = jax.random.split(key, 13)

    S, B, D = 8, 2, 32     # seq, batch, d_model  (seq-first like the PyTorch module)
    H = 4                  # nhead
    F = 64                 # dim_feedforward (small for the demo)

    def xavier(k, shape):
        fan_in, fan_out = shape
        lim = (6.0 / (fan_in + fan_out)) ** 0.5
        return jax.random.uniform(k, shape, jnp.float32, -lim, lim)

    # NOTE: the PyTorch module's special init (2*I for in/out projections) is just an
    # initial parameter value, not part of forward semantics; random weights exercise the
    # kernels more thoroughly.  Weight matrices live in bf16 (HBM traffic halved); the
    # reference uses the same (bf16-rounded) weights so only activation rounding counts
    # against the tolerance.
    params = {
        "ln1_g": 1.0 + 0.05 * jax.random.normal(ks[0], (1, D), jnp.float32),
        "ln1_b": 0.05 * jax.random.normal(ks[1], (1, D), jnp.float32),
        "ln2_g": 1.0 + 0.05 * jax.random.normal(ks[2], (1, D), jnp.float32),
        "ln2_b": 0.05 * jax.random.normal(ks[3], (1, D), jnp.float32),
        # stored as (in, out) == torch_weight.T
        "w_qkv": xavier(ks[4], (D, 3 * D)).astype(jnp.bfloat16),
        "b_qkv": 0.1 * jax.random.normal(ks[5], (1, 3 * D), jnp.float32),
        "w_o": xavier(ks[6], (D, D)).astype(jnp.bfloat16),
        "b_o": 0.1 * jax.random.normal(ks[7], (1, D), jnp.float32),
        "w_1": xavier(ks[8], (D, F)).astype(jnp.bfloat16),
        "b_1": 0.1 * jax.random.normal(ks[9], (1, F), jnp.float32),
        "w_2": xavier(ks[10], (F, D)).astype(jnp.bfloat16),
        "b_2": 0.1 * jax.random.normal(ks[11], (1, D), jnp.float32),
    }
    src = jax.random.normal(ks[12], (S, B, D), dtype=jnp.float32)

    fwd = jax.jit(lambda s, p: stable_transformer_layer(s, p, H))
    out = jax.block_until_ready(fwd(src, params))

    ref = _reference(src, params, H)
    assert out.shape == (S, B, D)
    # Relative-Frobenius check: tolerance covers bf16 activation storage + default-precision
    # MXU + approx reciprocal; any structural error (wrong residual/head split/norm) is O(1).
    rel_err = float(jnp.linalg.norm(out - ref) / jnp.linalg.norm(ref))
    assert rel_err < 2e-2, f"relative error too large: {rel_err}"

    print("KERNEL_OK")
</pallas_src>

<mosaic_0001>
module attributes {stable_mosaic.version = 11 : i64} {
  func.func @_linear_residual_kernel(%arg0: i32, %arg1: i32, %arg2: memref<16x32xbf16, #tpu.memory_space<vmem>>, %arg3: memref<32x32xbf16, #tpu.memory_space<vmem>>, %arg4: memref<1x32xf32, #tpu.memory_space<vmem>>, %arg5: memref<16x32xf32, #tpu.memory_space<vmem>>, %arg6: memref<16x32xf32, #tpu.memory_space<vmem>>) attributes {dimension_semantics = [#tpu.dimension_semantics<parallel>, #tpu.dimension_semantics<parallel>], iteration_bounds = array<i64: 1, 1>, scalar_prefetch = 0 : i64, scratch_operands = 0 : i64, tpu.core_type = #tpu.core_type<tc>, window_params = [{transform_indices = @transform_0, window_bounds = array<i64: 16, 32>}, {transform_indices = @transform_1, window_bounds = array<i64: 32, 32>}, {transform_indices = @transform_2, window_bounds = array<i64: 1, 32>}, {transform_indices = @transform_3, window_bounds = array<i64: 16, 32>}, {transform_indices = @transform_4, window_bounds = array<i64: 16, 32>}]} {
    %c0 = arith.constant 0 : index
    %c0_0 = arith.constant 0 : index
    %0 = vector.load %arg2[%c0, %c0_0] : memref<16x32xbf16, #tpu.memory_space<vmem>>, vector<16x32xbf16>
    %c0_1 = arith.constant 0 : index
    %c0_2 = arith.constant 0 : index
    %1 = vector.load %arg3[%c0_1, %c0_2] : memref<32x32xbf16, #tpu.memory_space<vmem>>, vector<32x32xbf16>
    %cst = arith.constant dense<0.000000e+00> : vector<16x32xf32>
    %2 = tpu.matmul %0, %1, %cst {dimension_numbers = #tpu.dot_dimension_numbers<[1], [0], [0], [1], [0, 0, 1, 1], [], []>} : vector<16x32xbf16>, vector<32x32xbf16>, vector<16x32xf32> -> vector<16x32xf32>
    %c0_3 = arith.constant 0 : index
    %c0_4 = arith.constant 0 : index
    %3 = vector.load %arg4[%c0_3, %c0_4] : memref<1x32xf32, #tpu.memory_space<vmem>>, vector<1x32xf32>
    %4 = vector.broadcast %3 : vector<1x32xf32> to vector<16x32xf32>
    %5 = arith.addf %2, %4 : vector<16x32xf32>
    %c0_5 = arith.constant 0 : index
    %c0_6 = arith.constant 0 : index
    %6 = vector.load %arg5[%c0_5, %c0_6] : memref<16x32xf32, #tpu.memory_space<vmem>>, vector<16x32xf32>
    %7 = arith.addf %5, %6 : vector<16x32xf32>
    %c0_7 = arith.constant 0 : index
    %c0_8 = arith.constant 0 : index
    %8 = vector.load %arg6[%c0_7, %c0_8] : memref<16x32xf32, #tpu.memory_space<vmem>>, vector<16x32xf32>
    tpu.vector_store %arg6[%c0_7, %c0_8], %7 {strides = array<i32>} : memref<16x32xf32, #tpu.memory_space<vmem>>, vector<16x32xf32>,
    return
  }
  func.func @transform_0(%arg0: i32, %arg1: i32) -> (i32, i32) {
    %c0_i32 = arith.constant 0 : i32
    %c0_i32_0 = arith.constant 0 : i32
    return %arg0, %c0_i32 : i32, i32
  }
  func.func @transform_1(%arg0: i32, %arg1: i32) -> (i32, i32) {
    %c0_i32 = arith.constant 0 : i32
    %c0_i32_0 = arith.constant 0 : i32
    return %c0_i32, %arg1 : i32, i32
  }
  func.func @transform_2(%arg0: i32, %arg1: i32) -> (i32, i32) {
    %c0_i32 = arith.constant 0 : i32
    %c0_i32_0 = arith.constant 0 : i32
    return %c0_i32, %arg1 : i32, i32
  }
  func.func @transform_3(%arg0: i32, %arg1: i32) -> (i32, i32) {
    %c0_i32 = arith.constant 0 : i32
    return %arg0, %arg1 : i32, i32
  }
  func.func @transform_4(%arg0: i32, %arg1: i32) -> (i32, i32) {
    %c0_i32 = arith.constant 0 : i32
    return %arg0, %arg1 : i32, i32
  }
}

module attributes {stable_mosaic.version = 11 : i64} {
  func.func @_ln_linear_kernel(%arg0: i32, %arg1: i32, %arg2: memref<16x32xf32, #tpu.memory_space<vmem>>, %arg3: memref<1x32xf32, #tpu.memory_space<vmem>>, %arg4: memref<1x32xf32, #tpu.memory_space<vmem>>, %arg5: memref<32x96xbf16, #tpu.memory_space<vmem>>, %arg6: memref<1x96xf32, #tpu.memory_space<vmem>>, %arg7: memref<16x96xbf16, #tpu.memory_space<vmem>>, %arg8: memref<16x32xbf16, #tpu.memory_space<vmem>>) attributes {dimension_semantics = [#tpu.dimension_semantics<parallel>, #tpu.dimension_semantics<arbitrary>], iteration_bounds = array<i64: 1, 1>, scalar_prefetch = 0 : i64, scratch_operands = 1 : i64, tpu.core_type = #tpu.core_type<tc>, window_params = [{transform_indices = @transform_0, window_bounds = array<i64: 16, 32>}, {pipeline_mode = #tpu.pipeline_mode<synchronous>, transform_indices = @transform_1, window_bounds = array<i64: 1, 32>}, {pipeline_mode = #tpu.pipeline_mode<synchronous>, transform_indices = @transform_2, window_bounds = array<i64: 1, 32>}, {transform_indices = @transform_3, window_bounds = array<i64: 32, 96>}, {transform_indices = @transform_4, window_bounds = array<i64: 1, 96>}, {transform_indices = @transform_5, window_bounds = array<i64: 16, 96>}]} {
    %c0_i32 = arith.constant 0 : i32
    %0 = arith.cmpi eq, %arg1, %c0_i32 : i32
    %1 = arith.extui %0 : i1 to i32
    %c0_i32_0 = arith.constant 0 : i32
    %2 = arith.cmpi ne, %1, %c0_i32_0 : i32
    scf.if %2 {
      %c0_8 = arith.constant 0 : index
      %c0_9 = arith.constant 0 : index
      %11 = vector.load %arg2[%c0_8, %c0_9] : memref<16x32xf32, #tpu.memory_space<vmem>>, vector<16x32xf32>
      %cst_10 = arith.constant dense<0.000000e+00> : vector<16xf32>
      %12 = vector.multi_reduction <add>, %11, %cst_10 [1] : vector<16x32xf32> to vector<16xf32>
      %13 = vector.shape_cast %12 : vector<16xf32> to vector<16x1xf32>
      %cst_11 = arith.constant 3.200000e+01 : f32
      %14 = vector.broadcast %cst_11 : f32 to vector<16x1xf32>
      %15 = arith.divf %13, %14 : vector<16x1xf32>
      %16 = vector.broadcast %15 : vector<16x1xf32> to vector<16x32xf32>
      %17 = arith.subf %11, %16 : vector<16x32xf32>
      %18 = arith.mulf %17, %17 : vector<16x32xf32>
      %cst_12 = arith.constant dense<0.000000e+00> : vector<16xf32>
      %19 = vector.multi_reduction <add>, %18, %cst_12 [1] : vector<16x32xf32> to vector<16xf32>
      %20 = vector.shape_cast %19 : vector<16xf32> to vector<16x1xf32>
      %cst_13 = arith.constant 3.200000e+01 : f32
      %21 = vector.broadcast %cst_13 : f32 to vector<16x1xf32>
      %22 = arith.divf %20, %21 : vector<16x1xf32>
      %cst_14 = arith.constant 9.99999974E-6 : f32
      %23 = vector.broadcast %cst_14 : f32 to vector<16x1xf32>
      %24 = arith.addf %22, %23 : vector<16x1xf32>
      %25 = math.rsqrt %24 : vector<16x1xf32>
      %26 = vector.broadcast %25 : vector<16x1xf32> to vector<16x32xf32>
      %27 = arith.mulf %17, %26 : vector<16x32xf32>
      %c0_15 = arith.constant 0 : index
      %c0_16 = arith.constant 0 : index
      %28 = vector.load %arg3[%c0_15, %c0_16] : memref<1x32xf32, #tpu.memory_space<vmem>>, vector<1x32xf32>
      %29 = vector.broadcast %28 : vector<1x32xf32> to vector<16x32xf32>
      %30 = arith.mulf %27, %29 : vector<16x32xf32>
      %c0_17 = arith.constant 0 : index
      %c0_18 = arith.constant 0 : index
      %31 = vector.load %arg4[%c0_17, %c0_18] : memref<1x32xf32, #tpu.memory_space<vmem>>, vector<1x32xf32>
      %32 = vector.broadcast %31 : vector<1x32xf32> to vector<16x32xf32>
      %33 = arith.addf %30, %32 : vector<16x32xf32>
      %34 = arith.truncf %33 : vector<16x32xf32> to vector<16x32xbf16>
      %c0_19 = arith.constant 0 : index
      %c0_20 = arith.constant 0 : index
      %35 = vector.load %arg8[%c0_19, %c0_20] : memref<16x32xbf16, #tpu.memory_space<vmem>>, vector<16x32xbf16>
      tpu.vector_store %arg8[%c0_19, %c0_20], %34 {strides = array<i32>} : memref<16x32xbf16, #tpu.memory_space<vmem>>, vector<16x32xbf16>,
    } else {
    }
    %c0 = arith.constant 0 : index
    %c0_1 = arith.constant 0 : index
    %3 = vector.load %arg8[%c0, %c0_1] : memref<16x32xbf16, #tpu.memory_space<vmem>>, vector<16x32xbf16>
    %c0_2 = arith.constant 0 : index
    %c0_3 = arith.constant 0 : index
    %4 = vector.load %arg5[%c0_2, %c0_3] : memref<32x96xbf16, #tpu.memory_space<vmem>>, vector<32x96xbf16>
    %cst = arith.constant dense<0.000000e+00> : vector<16x96xf32>
    %5 = tpu.matmul %3, %4, %cst {dimension_numbers = #tpu.dot_dimension_numbers<[1], [0], [0], [1], [0, 0, 1, 1], [], []>} : vector<16x32xbf16>, vector<32x96xbf16>, vector<16x96xf32> -> vector<16x96xf32>
    %c0_4 = arith.constant 0 : index
    %c0_5 = arith.constant 0 : index
    %6 = vector.load %arg6[%c0_4, %c0_5] : memref<1x96xf32, #tpu.memory_space<vmem>>, vector<1x96xf32>
    %7 = vector.broadcast %6 : vector<1x96xf32> to vector<16x96xf32>
    %8 = arith.addf %5, %7 : vector<16x96xf32>
    %9 = arith.truncf %8 : vector<16x96xf32> to vector<16x96xbf16>
    %c0_6 = arith.constant 0 : index
    %c0_7 = arith.constant 0 : index
    %10 = vector.load %arg7[%c0_6, %c0_7] : memref<16x96xbf16, #tpu.memory_space<vmem>>, vector<16x96xbf16>
    tpu.vector_store %arg7[%c0_6, %c0_7], %9 {strides = array<i32>} : memref<16x96xbf16, #tpu.memory_space<vmem>>, vector<16x96xbf16>,
    return
  }
  func.func @transform_0(%arg0: i32, %arg1: i32) -> (i32, i32) {
    %c0_i32 = arith.constant 0 : i32
    %c0_i32_0 = arith.constant 0 : i32
    return %arg0, %c0_i32 : i32, i32
  }
  func.func @transform_1(%arg0: i32, %arg1: i32) -> (i32, i32) {
    %c0_i32 = arith.constant 0 : i32
    %c0_i32_0 = arith.constant 0 : i32
    %c0_i32_1 = arith.constant 0 : i32
    return %c0_i32, %c0_i32_0 : i32, i32
  }
  func.func @transform_2(%arg0: i32, %arg1: i32) -> (i32, i32) {
    %c0_i32 = arith.constant 0 : i32
    %c0_i32_0 = arith.constant 0 : i32
    %c0_i32_1 = arith.constant 0 : i32
    return %c0_i32, %c0_i32_0 : i32, i32
  }
  func.func @transform_3(%arg0: i32, %arg1: i32) -> (i32, i32) {
    %c0_i32 = arith.constant 0 : i32
    %c0_i32_0 = arith.constant 0 : i32
    return %c0_i32, %arg1 : i32, i32
  }
  func.func @transform_4(%arg0: i32, %arg1: i32) -> (i32, i32) {
    %c0_i32 = arith.constant 0 : i32
    %c0_i32_0 = arith.constant 0 : i32
    return %c0_i32, %arg1 : i32, i32
  }
  func.func @transform_5(%arg0: i32, %arg1: i32) -> (i32, i32) {
    %c0_i32 = arith.constant 0 : i32
    return %arg0, %arg1 : i32, i32
  }
}

module attributes {stable_mosaic.version = 11 : i64} {
  func.func @_attn_kernel(%arg0: i32, %arg1: memref<1x8x96xbf16, #tpu.memory_space<vmem>>, %arg2: memref<1x8x32xbf16, #tpu.memory_space<vmem>>) attributes {dimension_semantics = [#tpu.dimension_semantics<parallel>], iteration_bounds = array<i64: 2>, scalar_prefetch = 0 : i64, scratch_operands = 0 : i64, tpu.core_type = #tpu.core_type<tc>, window_params = [{transform_indices = @transform_0, window_bounds = array<i64: 1, 8, 96>}, {transform_indices = @transform_1, window_bounds = array<i64: 1, 8, 32>}]} {
    %c0 = arith.constant 0 : index
    %c0_0 = arith.constant 0 : index
    %c0_1 = arith.constant 0 : index
    %0 = vector.load %arg1[%c0, %c0_0, %c0_1] : memref<1x8x96xbf16, #tpu.memory_space<vmem>>, vector<1x8x96xbf16>
    %1 = vector.shape_cast %0 : vector<1x8x96xbf16> to vector<8x96xbf16>
    %2 = vector.extract_strided_slice %1 {offsets = [0, 0], sizes = [8, 8], strides = [1, 1]} : vector<8x96xbf16> to vector<8x8xbf16>
    %3 = vector.extract_strided_slice %1 {offsets = [0, 32], sizes = [8, 8], strides = [1, 1]} : vector<8x96xbf16> to vector<8x8xbf16>
    %4 = vector.extract_strided_slice %1 {offsets = [0, 64], sizes = [8, 8], strides = [1, 1]} : vector<8x96xbf16> to vector<8x8xbf16>
    %cst = arith.constant dense<0.000000e+00> : vector<8x8xf32>
    %5 = tpu.matmul %2, %3, %cst {dimension_numbers = #tpu.dot_dimension_numbers<[1], [1], [0], [0], [0, 0, 1, 0], [], []>} : vector<8x8xbf16>, vector<8x8xbf16>, vector<8x8xf32> -> vector<8x8xf32>
    %cst_2 = arith.constant 0.353553385 : f32
    %6 = vector.broadcast %cst_2 : f32 to vector<8x8xf32>
    %7 = arith.mulf %5, %6 : vector<8x8xf32>
    %cst_3 = arith.constant dense<0xFF800000> : vector<8xf32>
    %8 = vector.multi_reduction <maximumf>, %7, %cst_3 [1] : vector<8x8xf32> to vector<8xf32>
    %9 = vector.shape_cast %8 : vector<8xf32> to vector<8x1xf32>
    %10 = vector.broadcast %9 : vector<8x1xf32> to vector<8x8xf32>
    %11 = arith.subf %7, %10 : vector<8x8xf32>
    %12 = math.exp %11 : vector<8x8xf32>
    %cst_4 = arith.constant dense<0.000000e+00> : vector<8xf32>
    %13 = vector.multi_reduction <add>, %12, %cst_4 [1] : vector<8x8xf32> to vector<8xf32>
    %14 = vector.shape_cast %13 : vector<8xf32> to vector<8x1xf32>
    %15 = arith.truncf %12 : vector<8x8xf32> to vector<8x8xbf16>
    %cst_5 = arith.constant dense<0.000000e+00> : vector<8x8xf32>
    %16 = tpu.matmul %15, %4, %cst_5 {dimension_numbers = #tpu.dot_dimension_numbers<[1], [0], [0], [1], [0, 0, 1, 1], [], []>} : vector<8x8xbf16>, vector<8x8xbf16>, vector<8x8xf32> -> vector<8x8xf32>
    %17 = tpu.reciprocal %14 {approx = true} : vector<8x1xf32> -> vector<8x1xf32>
    %18 = vector.broadcast %17 : vector<8x1xf32> to vector<8x8xf32>
    %19 = arith.mulf %16, %18 : vector<8x8xf32>
    %20 = vector.extract_strided_slice %1 {offsets = [0, 8], sizes = [8, 8], strides = [1, 1]} : vector<8x96xbf16> to vector<8x8xbf16>
    %21 = vector.extract_strided_slice %1 {offsets = [0, 40], sizes = [8, 8], strides = [1, 1]} : vector<8x96xbf16> to vector<8x8xbf16>
    %22 = vector.extract_strided_slice %1 {offsets = [0, 72], sizes = [8, 8], strides = [1, 1]} : vector<8x96xbf16> to vector<8x8xbf16>
    %cst_6 = arith.constant dense<0.000000e+00> : vector<8x8xf32>
    %23 = tpu.matmul %20, %21, %cst_6 {dimension_numbers = #tpu.dot_dimension_numbers<[1], [1], [0], [0], [0, 0, 1, 0], [], []>} : vector<8x8xbf16>, vector<8x8xbf16>, vector<8x8xf32> -> vector<8x8xf32>
    %cst_7 = arith.constant 0.353553385 : f32
    %24 = vector.broadcast %cst_7 : f32 to vector<8x8xf32>
    %25 = arith.mulf %23, %24 : vector<8x8xf32>
    %cst_8 = arith.constant dense<0xFF800000> : vector<8xf32>
    %26 = vector.multi_reduction <maximumf>, %25, %cst_8 [1] : vector<8x8xf32> to vector<8xf32>
    %27 = vector.shape_cast %26 : vector<8xf32> to vector<8x1xf32>
    %28 = vector.broadcast %27 : vector<8x1xf32> to vector<8x8xf32>
    %29 = arith.subf %25, %28 : vector<8x8xf32>
    %30 = math.exp %29 : vector<8x8xf32>
    %cst_9 = arith.constant dense<0.000000e+00> : vector<8xf32>
    %31 = vector.multi_reduction <add>, %30, %cst_9 [1] : vector<8x8xf32> to vector<8xf32>
    %32 = vector.shape_cast %31 : vector<8xf32> to vector<8x1xf32>
    %33 = arith.truncf %30 : vector<8x8xf32> to vector<8x8xbf16>
    %cst_10 = arith.constant dense<0.000000e+00> : vector<8x8xf32>
    %34 = tpu.matmul %33, %22, %cst_10 {dimension_numbers = #tpu.dot_dimension_numbers<[1], [0], [0], [1], [0, 0, 1, 1], [], []>} : vector<8x8xbf16>, vector<8x8xbf16>, vector<8x8xf32> -> vector<8x8xf32>
    %35 = tpu.reciprocal %32 {approx = true} : vector<8x1xf32> -> vector<8x1xf32>
    %36 = vector.broadcast %35 : vector<8x1xf32> to vector<8x8xf32>
    %37 = arith.mulf %34, %36 : vector<8x8xf32>
    %38 = vector.extract_strided_slice %1 {offsets = [0, 16], sizes = [8, 8], strides = [1, 1]} : vector<8x96xbf16> to vector<8x8xbf16>
    %39 = vector.extract_strided_slice %1 {offsets = [0, 48], sizes = [8, 8], strides = [1, 1]} : vector<8x96xbf16> to vector<8x8xbf16>
    %40 = vector.extract_strided_slice %1 {offsets = [0, 80], sizes = [8, 8], strides = [1, 1]} : vector<8x96xbf16> to vector<8x8xbf16>
    %cst_11 = arith.constant dense<0.000000e+00> : vector<8x8xf32>
    %41 = tpu.matmul %38, %39, %cst_11 {dimension_numbers = #tpu.dot_dimension_numbers<[1], [1], [0], [0], [0, 0, 1, 0], [], []>} : vector<8x8xbf16>, vector<8x8xbf16>, vector<8x8xf32> -> vector<8x8xf32>
    %cst_12 = arith.constant 0.353553385 : f32
    %42 = vector.broadcast %cst_12 : f32 to vector<8x8xf32>
    %43 = arith.mulf %41, %42 : vector<8x8xf32>
    %cst_13 = arith.constant dense<0xFF800000> : vector<8xf32>
    %44 = vector.multi_reduction <maximumf>, %43, %cst_13 [1] : vector<8x8xf32> to vector<8xf32>
    %45 = vector.shape_cast %44 : vector<8xf32> to vector<8x1xf32>
    %46 = vector.broadcast %45 : vector<8x1xf32> to vector<8x8xf32>
    %47 = arith.subf %43, %46 : vector<8x8xf32>
    %48 = math.exp %47 : vector<8x8xf32>
    %cst_14 = arith.constant dense<0.000000e+00> : vector<8xf32>
    %49 = vector.multi_reduction <add>, %48, %cst_14 [1] : vector<8x8xf32> to vector<8xf32>
    %50 = vector.shape_cast %49 : vector<8xf32> to vector<8x1xf32>
    %51 = arith.truncf %48 : vector<8x8xf32> to vector<8x8xbf16>
    %cst_15 = arith.constant dense<0.000000e+00> : vector<8x8xf32>
    %52 = tpu.matmul %51, %40, %cst_15 {dimension_numbers = #tpu.dot_dimension_numbers<[1], [0], [0], [1], [0, 0, 1, 1], [], []>} : vector<8x8xbf16>, vector<8x8xbf16>, vector<8x8xf32> -> vector<8x8xf32>
    %53 = tpu.reciprocal %50 {approx = true} : vector<8x1xf32> -> vector<8x1xf32>
    %54 = vector.broadcast %53 : vector<8x1xf32> to vector<8x8xf32>
    %55 = arith.mulf %52, %54 : vector<8x8xf32>
    %56 = vector.extract_strided_slice %1 {offsets = [0, 24], sizes = [8, 8], strides = [1, 1]} : vector<8x96xbf16> to vector<8x8xbf16>
    %57 = vector.extract_strided_slice %1 {offsets = [0, 56], sizes = [8, 8], strides = [1, 1]} : vector<8x96xbf16> to vector<8x8xbf16>
    %58 = vector.extract_strided_slice %1 {offsets = [0, 88], sizes = [8, 8], strides = [1, 1]} : vector<8x96xbf16> to vector<8x8xbf16>
    %cst_16 = arith.constant dense<0.000000e+00> : vector<8x8xf32>
    %59 = tpu.matmul %56, %57, %cst_16 {dimension_numbers = #tpu.dot_dimension_numbers<[1], [1], [0], [0], [0, 0, 1, 0], [], []>} : vector<8x8xbf16>, vector<8x8xbf16>, vector<8x8xf32> -> vector<8x8xf32>
    %cst_17 = arith.constant 0.353553385 : f32
    %60 = vector.broadcast %cst_17 : f32 to vector<8x8xf32>
    %61 = arith.mulf %59, %60 : vector<8x8xf32>
    %cst_18 = arith.constant dense<0xFF800000> : vector<8xf32>
    %62 = vector.multi_reduction <maximumf>, %61, %cst_18 [1] : vector<8x8xf32> to vector<8xf32>
    %63 = vector.shape_cast %62 : vector<8xf32> to vector<8x1xf32>
    %64 = vector.broadcast %63 : vector<8x1xf32> to vector<8x8xf32>
    %65 = arith.subf %61, %64 : vector<8x8xf32>
    %66 = math.exp %65 : vector<8x8xf32>
    %cst_19 = arith.constant dense<0.000000e+00> : vector<8xf32>
    %67 = vector.multi_reduction <add>, %66, %cst_19 [1] : vector<8x8xf32> to vector<8xf32>
    %68 = vector.shape_cast %67 : vector<8xf32> to vector<8x1xf32>
    %69 = arith.truncf %66 : vector<8x8xf32> to vector<8x8xbf16>
    %cst_20 = arith.constant dense<0.000000e+00> : vector<8x8xf32>
    %70 = tpu.matmul %69, %58, %cst_20 {dimension_numbers = #tpu.dot_dimension_numbers<[1], [0], [0], [1], [0, 0, 1, 1], [], []>} : vector<8x8xbf16>, vector<8x8xbf16>, vector<8x8xf32> -> vector<8x8xf32>
    %71 = tpu.reciprocal %68 {approx = true} : vector<8x1xf32> -> vector<8x1xf32>
    %72 = vector.broadcast %71 : vector<8x1xf32> to vector<8x8xf32>
    %73 = arith.mulf %70, %72 : vector<8x8xf32>
    %74 = tpu.concatenate %19, %37, %55, %73 in 1 : vector<8x8xf32>, vector<8x8xf32>, vector<8x8xf32>, vector<8x8xf32> -> vector<8x32xf32>
    %75 = arith.truncf %74 : vector<8x32xf32> to vector<8x32xbf16>
    %c0_21 = arith.constant 0 : index
    %c0_22 = arith.constant 0 : index
    %c0_23 = arith.constant 0 : index
    %76 = vector.load %arg2[%c0_21, %c0_22, %c0_23] : memref<1x8x32xbf16, #tpu.memory_space<vmem>>, vector<1x8x32xbf16>
    %77 = vector.shape_cast %76 : vector<1x8x32xbf16> to vector<8x32xbf16>
    %78 = vector.shape_cast %75 : vector<8x32xbf16> to vector<1x8x32xbf16>
    tpu.vector_store %arg2[%c0_21, %c0_22, %c0_23], %78 {strides = array<i32>} : memref<1x8x32xbf16, #tpu.memory_space<vmem>>, vector<1x8x32xbf16>,
    return
  }
  func.func @transform_0(%arg0: i32) -> (i32, i32, i32) {
    %c0_i32 = arith.constant 0 : i32
    %c0_i32_0 = arith.constant 0 : i32
    %c0_i32_1 = arith.constant 0 : i32
    return %arg0, %c0_i32, %c0_i32_0 : i32, i32, i32
  }
  func.func @transform_1(%arg0: i32) -> (i32, i32, i32) {
    %c0_i32 = arith.constant 0 : i32
    %c0_i32_0 = arith.constant 0 : i32
    %c0_i32_1 = arith.constant 0 : i32
    return %arg0, %c0_i32, %c0_i32_0 : i32, i32, i32
  }
}

module attributes {stable_mosaic.version = 11 : i64} {
  func.func @_ln_linear_kernel(%arg0: i32, %arg1: i32, %arg2: memref<16x32xf32, #tpu.memory_space<vmem>>, %arg3: memref<1x32xf32, #tpu.memory_space<vmem>>, %arg4: memref<1x32xf32, #tpu.memory_space<vmem>>, %arg5: memref<32x64xbf16, #tpu.memory_space<vmem>>, %arg6: memref<1x64xf32, #tpu.memory_space<vmem>>, %arg7: memref<16x64xbf16, #tpu.memory_space<vmem>>, %arg8: memref<16x32xbf16, #tpu.memory_space<vmem>>) attributes {dimension_semantics = [#tpu.dimension_semantics<parallel>, #tpu.dimension_semantics<arbitrary>], iteration_bounds = array<i64: 1, 1>, scalar_prefetch = 0 : i64, scratch_operands = 1 : i64, tpu.core_type = #tpu.core_type<tc>, window_params = [{transform_indices = @transform_0, window_bounds = array<i64: 16, 32>}, {pipeline_mode = #tpu.pipeline_mode<synchronous>, transform_indices = @transform_1, window_bounds = array<i64: 1, 32>}, {pipeline_mode = #tpu.pipeline_mode<synchronous>, transform_indices = @transform_2, window_bounds = array<i64: 1, 32>}, {transform_indices = @transform_3, window_bounds = array<i64: 32, 64>}, {transform_indices = @transform_4, window_bounds = array<i64: 1, 64>}, {transform_indices = @transform_5, window_bounds = array<i64: 16, 64>}]} {
    %c0_i32 = arith.constant 0 : i32
    %0 = arith.cmpi eq, %arg1, %c0_i32 : i32
    %1 = arith.extui %0 : i1 to i32
    %c0_i32_0 = arith.constant 0 : i32
    %2 = arith.cmpi ne, %1, %c0_i32_0 : i32
    scf.if %2 {
      %c0_12 = arith.constant 0 : index
      %c0_13 = arith.constant 0 : index
      %24 = vector.load %arg2[%c0_12, %c0_13] : memref<16x32xf32, #tpu.memory_space<vmem>>, vector<16x32xf32>
      %cst_14 = arith.constant dense<0.000000e+00> : vector<16xf32>
      %25 = vector.multi_reduction <add>, %24, %cst_14 [1] : vector<16x32xf32> to vector<16xf32>
      %26 = vector.shape_cast %25 : vector<16xf32> to vector<16x1xf32>
      %cst_15 = arith.constant 3.200000e+01 : f32
      %27 = vector.broadcast %cst_15 : f32 to vector<16x1xf32>
      %28 = arith.divf %26, %27 : vector<16x1xf32>
      %29 = vector.broadcast %28 : vector<16x1xf32> to vector<16x32xf32>
      %30 = arith.subf %24, %29 : vector<16x32xf32>
      %31 = arith.mulf %30, %30 : vector<16x32xf32>
      %cst_16 = arith.constant dense<0.000000e+00> : vector<16xf32>
      %32 = vector.multi_reduction <add>, %31, %cst_16 [1] : vector<16x32xf32> to vector<16xf32>
      %33 = vector.shape_cast %32 : vector<16xf32> to vector<16x1xf32>
      %cst_17 = arith.constant 3.200000e+01 : f32
      %34 = vector.broadcast %cst_17 : f32 to vector<16x1xf32>
      %35 = arith.divf %33, %34 : vector<16x1xf32>
      %cst_18 = arith.constant 9.99999974E-6 : f32
      %36 = vector.broadcast %cst_18 : f32 to vector<16x1xf32>
      %37 = arith.addf %35, %36 : vector<16x1xf32>
      %38 = math.rsqrt %37 : vector<16x1xf32>
      %39 = vector.broadcast %38 : vector<16x1xf32> to vector<16x32xf32>
      %40 = arith.mulf %30, %39 : vector<16x32xf32>
      %c0_19 = arith.constant 0 : index
      %c0_20 = arith.constant 0 : index
      %41 = vector.load %arg3[%c0_19, %c0_20] : memref<1x32xf32, #tpu.memory_space<vmem>>, vector<1x32xf32>
      %42 = vector.broadcast %41 : vector<1x32xf32> to vector<16x32xf32>
      %43 = arith.mulf %40, %42 : vector<16x32xf32>
      %c0_21 = arith.constant 0 : index
      %c0_22 = arith.constant 0 : index
      %44 = vector.load %arg4[%c0_21, %c0_22] : memref<1x32xf32, #tpu.memory_space<vmem>>, vector<1x32xf32>
      %45 = vector.broadcast %44 : vector<1x32xf32> to vector<16x32xf32>
      %46 = arith.addf %43, %45 : vector<16x32xf32>
      %47 = arith.truncf %46 : vector<16x32xf32> to vector<16x32xbf16>
      %c0_23 = arith.constant 0 : index
      %c0_24 = arith.constant 0 : index
      %48 = vector.load %arg8[%c0_23, %c0_24] : memref<16x32xbf16, #tpu.memory_space<vmem>>, vector<16x32xbf16>
      tpu.vector_store %arg8[%c0_23, %c0_24], %47 {strides = array<i32>} : memref<16x32xbf16, #tpu.memory_space<vmem>>, vector<16x32xbf16>,
    } else {
    }
    %c0 = arith.constant 0 : index
    %c0_1 = arith.constant 0 : index
    %3 = vector.load %arg8[%c0, %c0_1] : memref<16x32xbf16, #tpu.memory_space<vmem>>, vector<16x32xbf16>
    %c0_2 = arith.constant 0 : index
    %c0_3 = arith.constant 0 : index
    %4 = vector.load %arg5[%c0_2, %c0_3] : memref<32x64xbf16, #tpu.memory_space<vmem>>, vector<32x64xbf16>
    %cst = arith.constant dense<0.000000e+00> : vector<16x64xf32>
    %5 = tpu.matmul %3, %4, %cst {dimension_numbers = #tpu.dot_dimension_numbers<[1], [0], [0], [1], [0, 0, 1, 1], [], []>} : vector<16x32xbf16>, vector<32x64xbf16>, vector<16x64xf32> -> vector<16x64xf32>
    %c0_4 = arith.constant 0 : index
    %c0_5 = arith.constant 0 : index
    %6 = vector.load %arg6[%c0_4, %c0_5] : memref<1x64xf32, #tpu.memory_space<vmem>>, vector<1x64xf32>
    %7 = vector.broadcast %6 : vector<1x64xf32> to vector<16x64xf32>
    %8 = arith.addf %5, %7 : vector<16x64xf32>
    %cst_6 = arith.constant 5.000000e-01 : f32
    %9 = vector.broadcast %cst_6 : f32 to vector<16x64xf32>
    %10 = arith.mulf %9, %8 : vector<16x64xf32>
    %cst_7 = arith.constant 4.471500e-02 : f32
    %11 = vector.broadcast %cst_7 : f32 to vector<16x64xf32>
    %12 = arith.mulf %11, %8 : vector<16x64xf32>
    %13 = arith.mulf %12, %8 : vector<16x64xf32>
    %14 = arith.mulf %13, %8 : vector<16x64xf32>
    %15 = arith.addf %8, %14 : vector<16x64xf32>
    %cst_8 = arith.constant 0.797884583 : f32
    %16 = vector.broadcast %cst_8 : f32 to vector<16x64xf32>
    %17 = arith.mulf %16, %15 : vector<16x64xf32>
    %18 = math.tanh %17 : vector<16x64xf32>
    %cst_9 = arith.constant 1.000000e+00 : f32
    %19 = vector.broadcast %cst_9 : f32 to vector<16x64xf32>
    %20 = arith.addf %19, %18 : vector<16x64xf32>
    %21 = arith.mulf %10, %20 : vector<16x64xf32>
    %22 = arith.truncf %21 : vector<16x64xf32> to vector<16x64xbf16>
    %c0_10 = arith.constant 0 : index
    %c0_11 = arith.constant 0 : index
    %23 = vector.load %arg7[%c0_10, %c0_11] : memref<16x64xbf16, #tpu.memory_space<vmem>>, vector<16x64xbf16>
    tpu.vector_store %arg7[%c0_10, %c0_11], %22 {strides = array<i32>} : memref<16x64xbf16, #tpu.memory_space<vmem>>, vector<16x64xbf16>,
    return
  }
  func.func @transform_0(%arg0: i32, %arg1: i32) -> (i32, i32) {
    %c0_i32 = arith.constant 0 : i32
    %c0_i32_0 = arith.constant 0 : i32
    return %arg0, %c0_i32 : i32, i32
  }
  func.func @transform_1(%arg0: i32, %arg1: i32) -> (i32, i32) {
    %c0_i32 = arith.constant 0 : i32
    %c0_i32_0 = arith.constant 0 : i32
    %c0_i32_1 = arith.constant 0 : i32
    return %c0_i32, %c0_i32_0 : i32, i32
  }
  func.func @transform_2(%arg0: i32, %arg1: i32) -> (i32, i32) {
    %c0_i32 = arith.constant 0 : i32
    %c0_i32_0 = arith.constant 0 : i32
    %c0_i32_1 = arith.constant 0 : i32
    return %c0_i32, %c0_i32_0 : i32, i32
  }
  func.func @transform_3(%arg0: i32, %arg1: i32) -> (i32, i32) {
    %c0_i32 = arith.constant 0 : i32
    %c0_i32_0 = arith.constant 0 : i32
    return %c0_i32, %arg1 : i32, i32
  }
  func.func @transform_4(%arg0: i32, %arg1: i32) -> (i32, i32) {
    %c0_i32 = arith.constant 0 : i32
    %c0_i32_0 = arith.constant 0 : i32
    return %c0_i32, %arg1 : i32, i32
  }
  func.func @transform_5(%arg0: i32, %arg1: i32) -> (i32, i32) {
    %c0_i32 = arith.constant 0 : i32
    return %arg0, %arg1 : i32, i32
  }
}

module attributes {stable_mosaic.version = 11 : i64} {
  func.func @_linear_residual_kernel(%arg0: i32, %arg1: i32, %arg2: memref<16x64xbf16, #tpu.memory_space<vmem>>, %arg3: memref<64x32xbf16, #tpu.memory_space<vmem>>, %arg4: memref<1x32xf32, #tpu.memory_space<vmem>>, %arg5: memref<16x32xf32, #tpu.memory_space<vmem>>, %arg6: memref<16x32xf32, #tpu.memory_space<vmem>>) attributes {dimension_semantics = [#tpu.dimension_semantics<parallel>, #tpu.dimension_semantics<parallel>], iteration_bounds = array<i64: 1, 1>, scalar_prefetch = 0 : i64, scratch_operands = 0 : i64, tpu.core_type = #tpu.core_type<tc>, window_params = [{transform_indices = @transform_0, window_bounds = array<i64: 16, 64>}, {transform_indices = @transform_1, window_bounds = array<i64: 64, 32>}, {transform_indices = @transform_2, window_bounds = array<i64: 1, 32>}, {transform_indices = @transform_3, window_bounds = array<i64: 16, 32>}, {transform_indices = @transform_4, window_bounds = array<i64: 16, 32>}]} {
    %c0 = arith.constant 0 : index
    %c0_0 = arith.constant 0 : index
    %0 = vector.load %arg2[%c0, %c0_0] : memref<16x64xbf16, #tpu.memory_space<vmem>>, vector<16x64xbf16>
    %c0_1 = arith.constant 0 : index
    %c0_2 = arith.constant 0 : index
    %1 = vector.load %arg3[%c0_1, %c0_2] : memref<64x32xbf16, #tpu.memory_space<vmem>>, vector<64x32xbf16>
    %cst = arith.constant dense<0.000000e+00> : vector<16x32xf32>
    %2 = tpu.matmul %0, %1, %cst {dimension_numbers = #tpu.dot_dimension_numbers<[1], [0], [0], [1], [0, 0, 1, 1], [], []>} : vector<16x64xbf16>, vector<64x32xbf16>, vector<16x32xf32> -> vector<16x32xf32>
    %c0_3 = arith.constant 0 : index
    %c0_4 = arith.constant 0 : index
    %3 = vector.load %arg4[%c0_3, %c0_4] : memref<1x32xf32, #tpu.memory_space<vmem>>, vector<1x32xf32>
    %4 = vector.broadcast %3 : vector<1x32xf32> to vector<16x32xf32>
    %5 = arith.addf %2, %4 : vector<16x32xf32>
    %c0_5 = arith.constant 0 : index
    %c0_6 = arith.constant 0 : index
    %6 = vector.load %arg5[%c0_5, %c0_6] : memref<16x32xf32, #tpu.memory_space<vmem>>, vector<16x32xf32>
    %7 = arith.addf %5, %6 : vector<16x32xf32>
    %c0_7 = arith.constant 0 : index
    %c0_8 = arith.constant 0 : index
    %8 = vector.load %arg6[%c0_7, %c0_8] : memref<16x32xf32, #tpu.memory_space<vmem>>, vector<16x32xf32>
    tpu.vector_store %arg6[%c0_7, %c0_8], %7 {strides = array<i32>} : memref<16x32xf32, #tpu.memory_space<vmem>>, vector<16x32xf32>,
    return
  }
  func.func @transform_0(%arg0: i32, %arg1: i32) -> (i32, i32) {
    %c0_i32 = arith.constant 0 : i32
    %c0_i32_0 = arith.constant 0 : i32
    return %arg0, %c0_i32 : i32, i32
  }
  func.func @transform_1(%arg0: i32, %arg1: i32) -> (i32, i32) {
    %c0_i32 = arith.constant 0 : i32
    %c0_i32_0 = arith.constant 0 : i32
    return %c0_i32, %arg1 : i32, i32
  }
  func.func @transform_2(%arg0: i32, %arg1: i32) -> (i32, i32) {
    %c0_i32 = arith.constant 0 : i32
    %c0_i32_0 = arith.constant 0 : i32
    return %c0_i32, %arg1 : i32, i32
  }
  func.func @transform_3(%arg0: i32, %arg1: i32) -> (i32, i32) {
    %c0_i32 = arith.constant 0 : i32
    return %arg0, %arg1 : i32, i32
  }
  func.func @transform_4(%arg0: i32, %arg1: i32) -> (i32, i32) {
    %c0_i32 = arith.constant 0 : i32
    return %arg0, %arg1 : i32, i32
  }
}

</mosaic_0001>

<bundles_post_ra>
// kernel: _lambda_.7
= control target key start
LH: loop header
LB: loop body
LE: loop exit
PB: predicated region body
PF: predicated region fallthrough
CT: control target
= control target key end

     0   :  { %v124_v0 = vmov 0.0   ;;  %vm125_vm0 = vmmov 0   ;;  %vm48_vm1 = vcmask 261120   ;;  %s178_s1 = inlined_call_operand.vmem [shape: bf16[32,32], index: 1, kind: input, shape index: {}]   ;;  %s179_s0 = inlined_call_operand.vmem [shape: bf16[16,32], index: 0, kind: input, shape index: {}]   ;;  %s180_s2 = inlined_call_operand.vmem [shape: f32[1,32], index: 2, kind: input, shape index: {}]   ;;  %s181_s3 = inlined_call_operand.vmem [shape: f32[16,32], index: 3, kind: input, shape index: {}]   ;;  %s182_s4 = inlined_call_operand.vmem [shape: f32[16,32], index: 4, kind: output, shape index: {}]  }
   0x1   :  { %111 = vmatprep.subr.bf16.mxu0 %v124_v0  ;;  %v121_v1 = vld [vmem:[%s178_s1 + $0x8] sm:$0xff]   ;;  %115 = vmatprep.mubr.msk.bf16.mxu0 %vm125_vm0, %v124_v0  ;;  %v122_v2 = vld [vmem:[%s178_s1] sm:$0xff]  }
   0x2   :  { %112 = vmatpush3.bf16.msra.mxu0 %v121_v1  ;;  %v123_v3 = vld [vmem:[%s179_s0] sm:$0xff]   ;;  %v94_v11 = vld [vmem:[%s181_s3 + $0x8] sm:$0xff] }
   0x3   :  { %113 = vmatprep.subr.bf16.mxu0 %v124_v0  ;;  %v103_v4 = vld [vmem:[%s180_s2] ss:$0 sm:$0xff] }
   0x4   :  { %v93_v6 = vld [vmem:[%s181_s3] sm:$0xff] }
   0x6   :  { %114 = vmatpush3.bf16.msra.mxu0 %v122_v2 }
   0x9   :  { %116 = vmatmul.mubr.msk.bf16.vlgmr.msra.gmra.mxu0 %vm48_vm1, %v123_v3 }
  0xc9   :  { %v86_v5 = vpop.f32.mrf.mxu0 }
  0xca   :  { %v87_v7 = vadd.f32 %v103_v4, %v86_v5 }
  0xcb   :  { %v117_v8 = vpop.f32.mrf.mxu0 }
  0xcc   :  { %v95_v9 = vadd.f32 %v93_v6, %v87_v7 }
  0xcd   :  { %v89_v10 = vpop.f32.mrf.mxu0 }
  0xce   :  { %97 = vst.msk [vmem:[%s182_s4] sm:$0xff] %vm48_vm1, %v95_v9  ;;  %v90_v12 = vadd.f32 %v103_v4, %v89_v10 }
  0xcf   :  { %v118_v13 = vpop.f32.mrf.mxu0 }
  0xd0   :  { %v96_v14 = vadd.f32 %v94_v11, %v90_v12 }
  0xd2   :  { %98 = vst.msk [vmem:[%s182_s4 + $0x8] sm:$0xff] %vm48_vm1, %v96_v14 }

// kernel: _lambda_.5
= control target key start
LH: loop header
LB: loop body
LE: loop exit
PB: predicated region body
PF: predicated region fallthrough
CT: control target
= control target key end

     0   :  { %vm27_vm0 = vcmask 261120   ;;  %v209_v15 = vmov 0.0   ;;  %vm210_vm1 = vmmov 0   ;;  %vm81_vm2 = vcmask 257024   ;;  %s273_s0 = inlined_call_operand.vmem [shape: f32[16,32], index: 0, kind: input, shape index: {}]   ;;  %s274_s3 = inlined_call_operand.vmem [shape: bf16[32,96], index: 3, kind: input, shape index: {}]   ;;  %s275_s1 = inlined_call_operand.vmem [shape: f32[1,32], index: 1, kind: input, shape index: {}]   ;;  %s276_s2 = inlined_call_operand.vmem [shape: f32[1,32], index: 2, kind: input, shape index: {}]   ;;  %s277_s4 = inlined_call_operand.vmem [shape: f32[1,96], index: 4, kind: input, shape index: {}]   ;;  %s278_s5 = inlined_call_operand.vmem [shape: bf16[16,96], index: 5, kind: output, shape index: {}]  }
   0x1   :  { %v25_v0 = vld [vmem:[%s273_s0] sm:$0xff]  ;;  %v26_v1 = vld [vmem:[%s273_s0 + $0x8] sm:$0xff]  ;;  %192 = vmatprep.subr.bf16.mxu0 %v209_v15  ;;  %196 = vmatprep.mubr.msk.bf16.mxu0 %vm210_vm1, %v209_v15  ;;  %vm167_vm3 = vcmask 781312  }
   0x2   :  { %v28_v2 = vsel %vm27_vm0, %v25_v0, 0.0  ;;  %v31_v3 = vsel %vm27_vm0, %v26_v1, 0.0  ;;  %v202_v14 = vld [vmem:[%s274_s3 + $0x8] sm:$0xff]   ;;  %v203_v16 = vld [vmem:[%s274_s3] sm:$0xff]  }
   0x3   :  { %29 = vadd.xlane.f32.xlu0 %v28_v2  ;;  %193 = vmatpush3.bf16.msra.mxu0 %v202_v14  ;;  %v174_v24 = vld [vmem:[%s275_s1] ss:$0 sm:$0xff] }
   0x4   :  { %194 = vmatprep.subr.bf16.mxu0 %v209_v15  ;;  %v175_v26 = vld [vmem:[%s276_s2] ss:$0 sm:$0xff] }
   0x5   :  { %v178_v36 = vld [vmem:[%s277_s4] ss:$0 sm:$0xff] }
   0x7   :  { %32 = vadd.xlane.f32.xlu0 %v31_v3  ;;  %195 = vmatpush3.bf16.msra.mxu0 %v203_v16 }
  0x8c   :  { %v30_v4 = vpop.xlane.xlu0 %29 }
  0x8d   :  { %v35_v5 = vmul.f32 0.03125, %v30_v4 }
  0x8f   :  { %v37_v6 = vsub.f32 %v25_v0, %v35_v5 }
  0x90   :  { %v33_v7 = vpop.xlane.xlu0 %32 }
  0x91   :  { %v36_v8 = vmul.f32 0.03125, %v33_v7  ;;  %v39_v9 = vmul.f32 %v37_v6, %v37_v6 }
  0x93   :  { %v38_v10 = vsub.f32 %v26_v1, %v36_v8  ;;  %v41_v11 = vsel %vm27_vm0, %v39_v9, 0.0 }
  0x94   :  { %42 = vadd.xlane.f32.xlu1 %v41_v11 }
  0x95   :  { %v40_v12 = vmul.f32 %v38_v10, %v38_v10 }
  0x97   :  { %v44_v13 = vsel %vm27_vm0, %v40_v12, 0.0 }
  0x98   :  { %45 = vadd.xlane.f32.xlu1 %v44_v13 }
 0x11d   :  { %v43_v17 = vpop.xlane.xlu1 %42 }
 0x11e   :  { %v47_v18 = vmul.f32 0.03125, %v43_v17 }
 0x120   :  { %v49_v19 = vadd.f32 1e-05, %v47_v18 }
 0x121   :  { %v46_v20 = vpop.xlane.xlu1 %45 }
 0x122   :  { %205 = vrsqrt.f32 %v49_v19  ;;  %v48_v21 = vmul.f32 0.03125, %v46_v20 }
 0x124   :  { %v50_v22 = vadd.f32 1e-05, %v48_v21 }
 0x126   :  { %207 = vrsqrt.f32 %v50_v22 }
 0x12f   :  { %v206_v23 = vpop.eup %205 }
 0x130   :  { %v53_v25 = vmul.f32 %v206_v23, %v37_v6 }
 0x132   :  { %v62_v27 = vmul.f32 %v174_v24, %v53_v25 }
 0x133   :  { %v208_v28 = vpop.eup %207 }
 0x134   :  { %v71_v29 = vadd.f32 %v175_v26, %v62_v27  ;;  %v54_v30 = vmul.f32 %v208_v28, %v38_v10 }
 0x136   :  { %v185_v31 = vpack.c.bf16 %v71_v29, %v71_v29  ;;  %v63_v32 = vmul.f32 %v174_v24, %v54_v30 }
 0x138   :  { %82 = vst.msk [vmem:[#allocation2] sm:$0xf] %vm81_vm2, %v185_v31  ;;  %v72_v33 = vadd.f32 %v175_v26, %v63_v32 }
 0x13a   :  { %v186_v34 = vpack.c.bf16 %v72_v33, %v72_v33 }
 0x13c   :  { %83 = vst.msk [vmem:[#allocation2 + $0x4] sm:$0xf] %vm81_vm2, %v186_v34 }
 0x143   :  { %v204_v35 = vld [vmem:[#allocation2] sm:$0xff]  }
 0x144   :  { %197 = vmatmul.mubr.msk.bf16.vlgmr.msra.gmra.mxu0 %vm27_vm0, %v204_v35 }
 0x204   :  { %v152_v37 = vpop.f32.mrf.mxu0 }
 0x205   :  { %v153_v38 = vadd.f32 %v178_v36, %v152_v37 }
 0x206   :  { %v198_v39 = vpop.f32.mrf.mxu0 }
 0x207   :  { %v187_v40 = vpack.c.bf16 %v153_v38, %v153_v38 }
 0x208   :  { %v155_v41 = vpop.f32.mrf.mxu0 }
 0x209   :  { %168 = vst.msk [vmem:[%s278_s5] sm:$0xf] %vm167_vm3, %v187_v40  ;;  %v156_v42 = vadd.f32 %v178_v36, %v155_v41 }
 0x20a   :  { %v199_v43 = vpop.f32.mrf.mxu0 }
 0x20b   :  { %v188_v44 = vpack.c.bf16 %v156_v42, %v156_v42 }
 0x20d   :  { %169 = vst.msk [vmem:[%s278_s5 + $0x4] sm:$0xf] %vm167_vm3, %v188_v44 }

// kernel: _lambda_.6
= control target key start
LH: loop header
LB: loop body
LE: loop exit
PB: predicated region body
PF: predicated region fallthrough
CT: control target
= control target key end

     0   :  { %s791_s6 = smov 0   ;;  %s885_s0 = inlined_call_operand.vmem [shape: bf16[2,8,96], index: 0, kind: input, shape index: {}]   ;;  %s886_s1 = inlined_call_operand.vmem [shape: bf16[2,8,32], index: 1, kind: output, shape index: {}]  }
   0x1 LB: > { %s634_s7 = sadd.s32 4294967295, %s763_s6   ;;  %p638_p0 = scmp.ge.s32.totalorder %s763_s6, 1  ;;  %s763_s6 = sphi %s791_s6, %s11_s6  }
   0x2   : > { %p86_p1 = scmp.lt.s32.totalorder %s763_s6, 3 }
   0x4   : > { %p87_p2 = pnand %p638_p0, %p86_p1 }
   0x5   : > { %p104_p3 = scmp.lt.s32.totalorder (!%p87_p2), %s634_s7, 1  ;;  %s767_s12 = smov (!%p87_p2), 96  }
   0x6   : > { %90 = sbr.rel (%p87_p2) target bundleno = 1231 (0x4cf), region = 24  ;;  %s768_s13 = smov (!%p87_p2), 64  }
   0x7   : > { %s769_s14 = smov (!%p87_p2), 88   ;;  %s770_s15 = smov (!%p87_p2), 120  }
   0x8   : > { %s771_s16 = smov (!%p87_p2), 80   ;;  %s772_s17 = smov (!%p87_p2), 112  }
   0x9   : > { %s773_s18 = smov (!%p87_p2), 72   ;;  %s774_s19 = smov (!%p87_p2), 104  }
   0xa   : > { %s775_s20 = smov (!%p87_p2), 48   ;;  %s776_s21 = smov (!%p87_p2), 56  }
   0xb   : > { %v765_v0 = vmov 0.0   ;;  %vm766_vm0 = vmmov 0   ;;  %s888_s7 = smov (!%p104_p3, %s634_s7), 1  ;;  %vm119_vm1 = vcmask 64512   ;;  %vm182_vm2 = vcmask 1043456   ;;  %s777_s22 = smov 40  }
   0xc   : > { %668 = vmatprep.subr.bf16.mxu0 %v765_v0  ;;  %670 = vmatprep.mubr.msk.bf16.mxu0 %vm766_vm0, %v765_v0  ;;  %s639_s8 = sshll.u32 %s888_s7, 2  ;;  %s778_s23 = smov 8   ;;  %vm574_vm3 = vcmask 130048   ;;  %vm576_vm4 = vcmask 195584   ;;  %vm579_vm5 = vcmask 257024  }
   0xd   : > { %674 = vmatprep.subr.bf16.mxu1 %v765_v0  ;;  %676 = vmatprep.mubr.msk.bf16.mxu1 %vm766_vm0, %v765_v0  ;;  %s107_s11 = scalar_lea.vmem %s885_s0, %s639_s8  ;;  %s779_s24 = smov 16  }
   0xe   : > { %v113_v1 = vld [vmem:[%s107_s11] sm:$0xf]  ;;  %s780_s25 = smov 24   ;;  %s111_s28 = scalar_lea.vmem %s886_s1, %s639_s8 }
   0xf   : > { %v813_v2 = vcombine.low %v113_v1, %v113_v1 }
  0x11   : > { %117 = vrot.lane.b32.xlu0 %v813_v2, %s767_s12  ;;  %177 = vrot.lane.b32.xlu1 %v813_v2, %s768_s13 }
  0x15   : > { %230 = vrot.lane.b32.xlu1 %v813_v2, %s769_s14 }
  0x19   : > { %228 = vrot.lane.b32.xlu1 %v813_v2, %s770_s15 }
  0x1d   : > { %341 = vrot.lane.b32.xlu1 %v813_v2, %s771_s16 }
  0x21   : > { %339 = vrot.lane.b32.xlu1 %v813_v2, %s772_s17 }
  0x25   : > { %452 = vrot.lane.b32.xlu1 %v813_v2, %s773_s18 }
  0x29   : > { %450 = vrot.lane.b32.xlu1 %v813_v2, %s774_s19 }
  0x83   : > { %v118_v3 = vpop.permute.xlu0 %117  ;;  %v178_v11 = vpop.permute.xlu1 %177 }
  0x84   : > { %v124_v4 = vsel %vm119_vm1, %v118_v3, 0  ;;  %v184_v12 = vsel %vm182_vm2, %v178_v11, 0 }
  0x85   : > { %669 = vmatpush3.bf16.xpose.msra.mxu0 %v124_v4  ;;  %675 = vmatpush3.bf16.msra.mxu1 %v184_v12 }
  0x86   : > { %686 = vmatprep.subr.bf16.mxu0 %v765_v0  ;;  %680 = vmatprep.subr.bf16.mxu1 %v765_v0 }
  0x87   : > { %v231_v16 = vpop.permute.xlu1 %230 }
  0x88   : > { %v236_v19 = vsel %vm119_vm1, %v231_v16, 0 }
  0x8b   : > { %v229_v18 = vpop.permute.xlu1 %228 }
  0x8c   : > { %671 = vmatmul.mubr.msk.bf16.vlgmr.msra.gmra.mxu0 %vm119_vm1, %v113_v1 }
  0x8d   : > { %688 = vmatprep.mubr.msk.bf16.mxu0 %vm766_vm0, %v765_v0 }
  0x8f   : > { %v342_v21 = vpop.permute.xlu1 %341 }
  0x90   : > { %v347_v22 = vsel %vm119_vm1, %v342_v21, 0 }
  0x93   : > { %v340_v23 = vpop.permute.xlu1 %339 }
  0x97   : > { %v453_v24 = vpop.permute.xlu1 %452 }
  0x98   : > { %v458_v25 = vsel %vm119_vm1, %v453_v24, 0 }
  0x9b   : > { %v451_v26 = vpop.permute.xlu1 %450 }
 0x14c   : > { %v160_v5 = vpop.f32.mrf.mxu0 }
 0x14d   : > { %v166_v6 = vmul.f32 0.35355338, %v160_v5 }
 0x14e   : > { %v672_v7 = vpop.f32.mrf.mxu0 }
 0x14f   : > { %v167_v8 = vsel %vm119_vm1, %v166_v6, -inf }
 0x150   : > { %168 = vmax.xlane.f32.xlu0 %v167_v8  ;;  %v163_v9 = vpop.f32.mrf.mxu0 }
 0x152   : > { %v673_v10 = vpop.f32.mrf.mxu0 }
 0x1d9   : > { %v169_v13 = vpop.xlane.xlu0 %168 }
 0x1da   : > { %v170_v14 = vsub.f32 %v166_v6, %v169_v13 }
 0x1dc   : > { %v171_v15 = vmul.f32 1.442695, %v170_v14 }
 0x1de   : > { %741 = vpow2.f32 %v171_v15 }
 0x1eb   : > { %v831_v17 = vpop.eup %741 }
 0x1ec   : > { %v176_v20 = vpack.c.bf16 %v831_v17, %v831_v17  ;;  %v173_v10 = vsel %vm119_vm1, %v831_v17, 0.0 }
 0x1ee   : > { %677 = vmatmul.mubr.msk.bf16.vlgmr.msra.gmra.mxu1 %vm119_vm1, %v176_v20 }
 0x1ef   : > { %681 = vmatpush3.bf16.xpose.msra.mxu1 %v236_v19  ;;  %682 = vmatprep.mubr.msk.bf16.mxu1 %vm766_vm0, %v765_v0 }
 0x1f0   : > { %692 = vmatprep.subr.bf16.mxu1 %v765_v0 }
 0x1f6   : > { %683 = vmatmul.mubr.msk.bf16.vlgmr.msra.gmra.mxu1 %vm119_vm1, %v229_v18 }
 0x1f7   : > { %693 = vmatpush3.bf16.xpose.msra.mxu1 %v347_v22  ;;  %694 = vmatprep.mubr.msk.bf16.mxu1 %vm766_vm0, %v765_v0 }
 0x1f8   : > { %704 = vmatprep.subr.bf16.mxu1 %v765_v0 }
 0x1fe   : > { %695 = vmatmul.mubr.msk.bf16.vlgmr.msra.gmra.mxu1 %vm119_vm1, %v340_v23 }
 0x1ff   : > { %705 = vmatpush3.bf16.xpose.msra.mxu1 %v458_v25  ;;  %706 = vmatprep.mubr.msk.bf16.mxu1 %vm766_vm0, %v765_v0 }
 0x206   : > { %707 = vmatmul.mubr.msk.bf16.vlgmr.msra.gmra.mxu1 %vm119_vm1, %v451_v26 }
 0x2ae   : > { %v850_v27 = vpop.f32.mrf.mxu1 }
 0x2b0   : > { %v678_v28 = vpop.f32.mrf.mxu1 }
 0x2b2   : > { %v223_v29 = vpop.f32.mrf.mxu1 }
 0x2b4   : > { %v679_v30 = vpop.f32.mrf.mxu1 }
 0x2b6   : > { %v272_v31 = vpop.f32.mrf.mxu1 }
 0x2b7   : > { %v278_v32 = vmul.f32 0.35355338, %v272_v31 }
 0x2b8   : > { %v684_v33 = vpop.f32.mrf.mxu1 }
 0x2b9   : > { %v279_v34 = vsel %vm119_vm1, %v278_v32, -inf }
 0x2ba   : > { %280 = vmax.xlane.f32.xlu1 %v279_v34  ;;  %v275_v35 = vpop.f32.mrf.mxu1 }
 0x2bc   : > { %v685_v36 = vpop.f32.mrf.mxu1 }
 0x2be   : > { %v383_v37 = vpop.f32.mrf.mxu1 }
 0x2bf   : > { %v389_v38 = vmul.f32 0.35355338, %v383_v37 }
 0x2c0   : > { %v696_v39 = vpop.f32.mrf.mxu1 }
 0x2c1   : > { %v390_v40 = vsel %vm119_vm1, %v389_v38, -inf }
 0x2c2   : > { %391 = vmax.xlane.f32.xlu0 %v390_v40  ;;  %v386_v41 = vpop.f32.mrf.mxu1 }
 0x2c4   : > { %v697_v42 = vpop.f32.mrf.mxu1 }
 0x2c6   : > { %v494_v43 = vpop.f32.mrf.mxu1 }
 0x2c7   : > { %v500_v47 = vmul.f32 0.35355338, %v494_v43 }
 0x2c8   : > { %v708_v44 = vpop.f32.mrf.mxu1 }
 0x2c9   : > { %v501_v48 = vsel %vm119_vm1, %v500_v47, -inf }
 0x2ca   : > { %v497_v45 = vpop.f32.mrf.mxu1 }
 0x2cb   : > { %400 = vrot.lane.b32.xlu1 %v813_v2, %s775_s20 }
 0x2cc   : > { %v709_v46 = vpop.f32.mrf.mxu1 }
 0x2d8   : > { %289 = vrot.lane.b32.xlu0 %v813_v2, %s776_s21 }
 0x2f7   : > { %502 = vmax.xlane.f32.xlu0 %v501_v48 }
 0x30d   : > { %511 = vrot.lane.b32.xlu0 %v813_v2, %s777_s22 }
 0x343   : > { %v281_v49 = vpop.xlane.xlu1 %280 }
 0x344   : > { %v282_v50 = vsub.f32 %v278_v32, %v281_v49 }
 0x346   : > { %v283_v51 = vmul.f32 1.442695, %v282_v50 }
 0x347   : > { %v401_v57 = vpop.permute.xlu1 %400 }
 0x348   : > { %743 = vpow2.f32 %v283_v51  ;;  %v406_v61 = vsel %vm182_vm2, %v401_v57, 0 }
 0x34b   : > { %v392_v52 = vpop.xlane.xlu0 %391 }
 0x34c   : > { %v393_v53 = vsub.f32 %v389_v38, %v392_v52 }
 0x34e   : > { %v394_v54 = vmul.f32 1.442695, %v393_v53 }
 0x34f   : > { %v290_v55 = vpop.permute.xlu0 %289 }
 0x350   : > { %745 = vpow2.f32 %v394_v54  ;;  %v295_v56 = vsel %vm182_vm2, %v290_v55, 0 }
 0x351   : > { %687 = vmatpush3.bf16.msra.mxu0 %v295_v56 }
 0x352   : > { %698 = vmatprep.subr.bf16.mxu0 %v765_v0 }
 0x355   : > { %v744_v58 = vpop.eup %743 }
 0x356   : > { %v285_v59 = vsel %vm119_vm1, %v744_v58, 0.0  ;;  %v288_v60 = vpack.c.bf16 %v744_v58, %v744_v58 }
 0x357   : > { %286 = vadd.xlane.f32.xlu0 %v285_v59 }
 0x358   : > { %689 = vmatmul.mubr.msk.bf16.vlgmr.msra.gmra.mxu0 %vm119_vm1, %v288_v60 }
 0x359   : > { %699 = vmatpush3.bf16.msra.mxu0 %v406_v61  ;;  %700 = vmatprep.mubr.msk.bf16.mxu0 %vm766_vm0, %v765_v0 }
 0x35a   : > { %710 = vmatprep.subr.bf16.mxu0 %v765_v0 }
 0x35d   : > { %v746_v62 = vpop.eup %745 }
 0x35e   : > { %v396_v63 = vsel %vm119_vm1, %v746_v62, 0.0  ;;  %v399_v1 = vpack.c.bf16 %v746_v62, %v746_v62 }
 0x35f   : > { %397 = vadd.xlane.f32.xlu1 %v396_v63 }
 0x360   : > { %701 = vmatmul.mubr.msk.bf16.vlgmr.msra.gmra.mxu0 %vm119_vm1, %v399_v1 }
 0x361   : > { %712 = vmatprep.mubr.msk.bf16.mxu0 %vm766_vm0, %v765_v0 }
 0x380   : > { %v503_v2 = vpop.xlane.xlu0 %502 }
 0x381   : > { %v504_v3 = vsub.f32 %v500_v47, %v503_v2 }
 0x383   : > { %v505_v4 = vmul.f32 1.442695, %v504_v3 }
 0x384   : > { %v512_v5 = vpop.permute.xlu0 %511 }
 0x385   : > { %747 = vpow2.f32 %v505_v4  ;;  %v517_v6 = vsel %vm182_vm2, %v512_v5, 0 }
 0x386   : > { %711 = vmatpush3.bf16.msra.mxu0 %v517_v6 }
 0x392   : > { %v748_v7 = vpop.eup %747 }
 0x393   : > { %v507_v8 = vsel %vm119_vm1, %v748_v7, 0.0  ;;  %v510_v9 = vpack.c.bf16 %v748_v7, %v748_v7 }
 0x394   : > { %508 = vadd.xlane.f32.xlu0 %v507_v8 }
 0x395   : > { %713 = vmatmul.mubr.msk.bf16.vlgmr.msra.gmra.mxu0 %vm119_vm1, %v510_v9 }
 0x398   : > { %174 = vadd.xlane.f32.xlu0 %v173_v10 }
 0x3e0   : > { %v287_v0 = vpop.xlane.xlu0 %286 }
 0x3e1   : > { %749 = vrcp.f32 %v287_v0 }
 0x3e8   : > { %v398_v11 = vpop.xlane.xlu1 %397 }
 0x3e9   : > { %751 = vrcp.f32 %v398_v11 }
 0x3ee   : > { %v750_v12 = vpop.eup %749 }
 0x3f6   : > { %v752_v19 = vpop.eup %751 }
 0x418   : > { %v331_v13 = vpop.f32.mrf.mxu0 }
 0x419   : > { %v338_v14 = vmul.f32 %v750_v12, %v331_v13 }
 0x41a   : > { %v690_v15 = vpop.f32.mrf.mxu0 }
 0x41b   : > { %562 = vrot.lane.b32.xlu0 %v338_v14, %s778_s23 }
 0x41c   : > { %v334_v16 = vpop.f32.mrf.mxu0 }
 0x41d   : > { %v509_v24 = vpop.xlane.xlu0 %508 }
 0x41e   : > { %v691_v18 = vpop.f32.mrf.mxu0  ;;  %753 = vrcp.f32 %v509_v24 }
 0x420   : > { %v442_v20 = vpop.f32.mrf.mxu0 }
 0x421   : > { %v449_v21 = vmul.f32 %v752_v19, %v442_v20  ;;  %v175_v32 = vpop.xlane.xlu0 %174 }
 0x422   : > { %v702_v22 = vpop.f32.mrf.mxu0  ;;  %755 = vrcp.f32 %v175_v32 }
 0x423   : > { %566 = vrot.lane.b32.xlu1 %v449_v21, %s779_s24 }
 0x424   : > { %v445_v17 = vpop.f32.mrf.mxu0 }
 0x426   : > { %v703_v23 = vpop.f32.mrf.mxu0 }
 0x42b   : > { %v754_v25 = vpop.eup %753 }
 0x42f   : > { %v756_v33 = vpop.eup %755 }
 0x430   : > { %v227_v35 = vmul.f32 %v756_v33, %v850_v27 }
 0x455   : > { %v553_v26 = vpop.f32.mrf.mxu0 }
 0x456   : > { %v560_v28 = vmul.f32 %v754_v25, %v553_v26 }
 0x457   : > { %v714_v29 = vpop.f32.mrf.mxu0 }
 0x458   : > { %570 = vrot.lane.b32.xlu0 %v560_v28, %s780_s25 }
 0x459   : > { %v556_v30 = vpop.f32.mrf.mxu0 }
 0x45b   : > { %v715_v31 = vpop.f32.mrf.mxu0 }
 0x48d   : > { %v563_v34 = vpop.permute.xlu0 %562 }
 0x48e   : > { %v573_v37 = vsel %vm119_vm1, %v227_v35, %v563_v34 }
 0x495   : > { %v567_v36 = vpop.permute.xlu1 %566 }
 0x496   : > { %v575_v38 = vsel %vm574_vm3, %v573_v37, %v567_v36 }
 0x4ca   : > { %v571_v39 = vpop.permute.xlu0 %570 }
 0x4cb   : > { %v577_v40 = vsel %vm576_vm4, %v575_v38, %v571_v39 }
 0x4cc   : > { %v578_v41 = vpack.c.bf16 %v577_v40, %v577_v40 }
 0x4ce   : > { %580 = vst.msk [vmem:[%s111_s28] sm:$0xf] %vm579_vm5, %v578_v41 }
 0x4cf PF: > { %s11_s6 = sadd.s32 1, %s763_s6  }
 0x4d0   : > { %p8_p4 = scmp.ge.s32.totalorder %s11_s6, 4  }
 0x4d2   :  { %10 = sbr.rel (!%p8_p4) target bundleno = 1 (0x1), region = 54 }

// kernel: _lambda_.8
= control target key start
LH: loop header
LB: loop body
LE: loop exit
PB: predicated region body
PF: predicated region fallthrough
CT: control target
= control target key end

     0   :  { %vm27_vm0 = vcmask 261120   ;;  %v231_v15 = vmov 0.0   ;;  %vm232_vm1 = vmmov 0   ;;  %vm81_vm2 = vcmask 257024   ;;  %s295_s0 = inlined_call_operand.vmem [shape: f32[16,32], index: 0, kind: input, shape index: {}]   ;;  %s296_s3 = inlined_call_operand.vmem [shape: bf16[32,64], index: 3, kind: input, shape index: {}]   ;;  %s297_s1 = inlined_call_operand.vmem [shape: f32[1,32], index: 1, kind: input, shape index: {}]   ;;  %s298_s2 = inlined_call_operand.vmem [shape: f32[1,32], index: 2, kind: input, shape index: {}]   ;;  %s299_s4 = inlined_call_operand.vmem [shape: f32[1,64], index: 4, kind: input, shape index: {}]   ;;  %s300_s5 = inlined_call_operand.vmem [shape: bf16[16,64], index: 5, kind: output, shape index: {}]  }
   0x1   :  { %v25_v0 = vld [vmem:[%s295_s0] sm:$0xff]  ;;  %v26_v1 = vld [vmem:[%s295_s0 + $0x8] sm:$0xff]  ;;  %210 = vmatprep.subr.bf16.mxu0 %v231_v15  ;;  %214 = vmatprep.mubr.msk.bf16.mxu0 %vm232_vm1, %v231_v15  ;;  %vm185_vm3 = vcmask 519168  }
   0x2   :  { %v28_v2 = vsel %vm27_vm0, %v25_v0, 0.0  ;;  %v31_v3 = vsel %vm27_vm0, %v26_v1, 0.0  ;;  %v220_v14 = vld [vmem:[%s296_s3 + $0x8] sm:$0xff]   ;;  %v221_v16 = vld [vmem:[%s296_s3] sm:$0xff]  }
   0x3   :  { %29 = vadd.xlane.f32.xlu0 %v28_v2  ;;  %211 = vmatpush3.bf16.msra.mxu0 %v220_v14  ;;  %v192_v24 = vld [vmem:[%s297_s1] ss:$0 sm:$0xff] }
   0x4   :  { %212 = vmatprep.subr.bf16.mxu0 %v231_v15  ;;  %v193_v26 = vld [vmem:[%s298_s2] ss:$0 sm:$0xff] }
   0x5   :  { %v196_v36 = vld [vmem:[%s299_s4] ss:$0 sm:$0xff] }
   0x7   :  { %32 = vadd.xlane.f32.xlu0 %v31_v3  ;;  %213 = vmatpush3.bf16.msra.mxu0 %v221_v16 }
  0x8c   :  { %v30_v4 = vpop.xlane.xlu0 %29 }
  0x8d   :  { %v35_v5 = vmul.f32 0.03125, %v30_v4 }
  0x8f   :  { %v37_v6 = vsub.f32 %v25_v0, %v35_v5 }
  0x90   :  { %v33_v7 = vpop.xlane.xlu0 %32 }
  0x91   :  { %v36_v8 = vmul.f32 0.03125, %v33_v7  ;;  %v39_v9 = vmul.f32 %v37_v6, %v37_v6 }
  0x93   :  { %v38_v10 = vsub.f32 %v26_v1, %v36_v8  ;;  %v41_v11 = vsel %vm27_vm0, %v39_v9, 0.0 }
  0x94   :  { %42 = vadd.xlane.f32.xlu1 %v41_v11 }
  0x95   :  { %v40_v12 = vmul.f32 %v38_v10, %v38_v10 }
  0x97   :  { %v44_v13 = vsel %vm27_vm0, %v40_v12, 0.0 }
  0x98   :  { %45 = vadd.xlane.f32.xlu1 %v44_v13 }
 0x11d   :  { %v43_v17 = vpop.xlane.xlu1 %42 }
 0x11e   :  { %v47_v18 = vmul.f32 0.03125, %v43_v17 }
 0x120   :  { %v49_v19 = vadd.f32 1e-05, %v47_v18 }
 0x121   :  { %v46_v20 = vpop.xlane.xlu1 %45 }
 0x122   :  { %223 = vrsqrt.f32 %v49_v19  ;;  %v48_v21 = vmul.f32 0.03125, %v46_v20 }
 0x124   :  { %v50_v22 = vadd.f32 1e-05, %v48_v21 }
 0x126   :  { %225 = vrsqrt.f32 %v50_v22 }
 0x12f   :  { %v224_v23 = vpop.eup %223 }
 0x130   :  { %v53_v25 = vmul.f32 %v224_v23, %v37_v6 }
 0x132   :  { %v62_v27 = vmul.f32 %v192_v24, %v53_v25 }
 0x133   :  { %v226_v28 = vpop.eup %225 }
 0x134   :  { %v71_v29 = vadd.f32 %v193_v26, %v62_v27  ;;  %v54_v30 = vmul.f32 %v226_v28, %v38_v10 }
 0x136   :  { %v203_v31 = vpack.c.bf16 %v71_v29, %v71_v29  ;;  %v63_v32 = vmul.f32 %v192_v24, %v54_v30 }
 0x138   :  { %82 = vst.msk [vmem:[#allocation2] sm:$0xf] %vm81_vm2, %v203_v31  ;;  %v72_v33 = vadd.f32 %v193_v26, %v63_v32 }
 0x13a   :  { %v204_v34 = vpack.c.bf16 %v72_v33, %v72_v33 }
 0x13c   :  { %83 = vst.msk [vmem:[#allocation2 + $0x4] sm:$0xf] %vm81_vm2, %v204_v34 }
 0x143   :  { %v222_v35 = vld [vmem:[#allocation2] sm:$0xff]  }
 0x144   :  { %215 = vmatmul.mubr.msk.bf16.vlgmr.msra.gmra.mxu0 %vm27_vm0, %v222_v35 }
 0x204   :  { %v152_v37 = vpop.f32.mrf.mxu0 }
 0x205   :  { %v153_v38 = vadd.f32 %v196_v36, %v152_v37 }
 0x206   :  { %v216_v39 = vpop.f32.mrf.mxu0 }
 0x207   :  { %v161_v40 = vmul.f32 0.044715, %v153_v38  ;;  %v159_v54 = vmul.f32 0.5, %v153_v38 }
 0x208   :  { %v155_v41 = vpop.f32.mrf.mxu0 }
 0x209   :  { %v163_v42 = vmul.f32 %v161_v40, %v153_v38  ;;  %v156_v43 = vadd.f32 %v196_v36, %v155_v41 }
 0x20a   :  { %v217_v44 = vpop.f32.mrf.mxu0 }
 0x20b   :  { %v165_v45 = vmul.f32 %v163_v42, %v153_v38  ;;  %v162_v46 = vmul.f32 0.044715, %v156_v43  ;;  %v160_v59 = vmul.f32 0.5, %v156_v43 }
 0x20d   :  { %v167_v47 = vadd.f32 %v165_v45, %v153_v38  ;;  %v164_v48 = vmul.f32 %v162_v46, %v156_v43 }
 0x20f   :  { %v169_v49 = vmul.f32 0.7978846, %v167_v47  ;;  %v166_v50 = vmul.f32 %v164_v48, %v156_v43 }
 0x211   :  { %227 = vtanh.f32 %v169_v49  ;;  %v168_v51 = vadd.f32 %v166_v50, %v156_v43 }
 0x213   :  { %v170_v52 = vmul.f32 0.7978846, %v168_v51 }
 0x215   :  { %229 = vtanh.f32 %v170_v52 }
 0x21e   :  { %v228_v53 = vpop.eup %227 }
 0x21f   :  { %v173_v55 = vadd.f32 1.0, %v228_v53 }
 0x221   :  { %v175_v56 = vmul.f32 %v173_v55, %v159_v54 }
 0x222   :  { %v230_v57 = vpop.eup %229 }
 0x223   :  { %v205_v58 = vpack.c.bf16 %v175_v56, %v175_v56  ;;  %v174_v60 = vadd.f32 1.0, %v230_v57 }
 0x225   :  { %186 = vst.msk [vmem:[%s300_s5] sm:$0xf] %vm185_vm3, %v205_v58  ;;  %v176_v61 = vmul.f32 %v174_v60, %v160_v59 }
 0x227   :  { %v206_v62 = vpack.c.bf16 %v176_v61, %v176_v61 }
 0x229   :  { %187 = vst.msk [vmem:[%s300_s5 + $0x4] sm:$0xf] %vm185_vm3, %v206_v62 }

// kernel: _lambda_.9
= control target key start
LH: loop header
LB: loop body
LE: loop exit
PB: predicated region body
PF: predicated region fallthrough
CT: control target
= control target key end

     0   :  { %v151_v0 = vmov 0.0   ;;  %vm152_vm0 = vmmov 0   ;;  %vm64_vm1 = vcmask 523264   ;;  %vm113_vm2 = vcmask 261120   ;;  %s208_s1 = inlined_call_operand.vmem [shape: bf16[64,32], index: 1, kind: input, shape index: {}]   ;;  %s209_s0 = inlined_call_operand.vmem [shape: bf16[16,64], index: 0, kind: input, shape index: {}]   ;;  %s210_s2 = inlined_call_operand.vmem [shape: f32[1,32], index: 2, kind: input, shape index: {}]   ;;  %s211_s3 = inlined_call_operand.vmem [shape: f32[16,32], index: 3, kind: input, shape index: {}]   ;;  %s212_s4 = inlined_call_operand.vmem [shape: f32[16,32], index: 4, kind: output, shape index: {}]  }
   0x1   :  { %132 = vmatprep.subr.bf16.mxu0 %v151_v0  ;;  %v146_v1 = vld [vmem:[%s208_s1 + $0x18] sm:$0xff]   ;;  %140 = vmatprep.mubr.msk.bf16.mxu0 %vm152_vm0, %v151_v0  ;;  %v147_v2 = vld [vmem:[%s208_s1 + $0x10] sm:$0xff]   ;;  %v148_v3 = vld [vmem:[%s208_s1 + $0x8] sm:$0xff]  }
   0x2   :  { %133 = vmatpush3.bf16.msra.mxu0 %v146_v1  ;;  %v149_v4 = vld [vmem:[%s208_s1] sm:$0xff]   ;;  %v110_v13 = vld [vmem:[%s211_s3 + $0x8] sm:$0xff] }
   0x3   :  { %134 = vmatprep.subr.bf16.mxu0 %v151_v0  ;;  %v150_v5 = vld [vmem:[%s209_s0] sm:$0xff]  }
   0x4   :  { %v120_v6 = vld [vmem:[%s210_s2] ss:$0 sm:$0xff] }
   0x5   :  { %v109_v8 = vld [vmem:[%s211_s3] sm:$0xff] }
   0x6   :  { %135 = vmatpush3.bf16.msra.mxu0 %v147_v2 }
   0x7   :  { %136 = vmatprep.subr.bf16.mxu0 %v151_v0 }
   0xa   :  { %137 = vmatpush3.bf16.msra.mxu0 %v148_v3 }
   0xb   :  { %138 = vmatprep.subr.bf16.mxu0 %v151_v0 }
   0xe   :  { %139 = vmatpush3.bf16.msra.mxu0 %v149_v4 }
  0x11   :  { %141 = vmatmul.mubr.msk.bf16.vlgmr.msra.gmra.mxu0 %vm64_vm1, %v150_v5 }
  0xd1   :  { %v102_v7 = vpop.f32.mrf.mxu0 }
  0xd2   :  { %v103_v9 = vadd.f32 %v120_v6, %v102_v7 }
  0xd3   :  { %v142_v10 = vpop.f32.mrf.mxu0 }
  0xd4   :  { %v111_v11 = vadd.f32 %v109_v8, %v103_v9 }
  0xd5   :  { %v105_v12 = vpop.f32.mrf.mxu0 }
  0xd6   :  { %114 = vst.msk [vmem:[%s212_s4] sm:$0xff] %vm113_vm2, %v111_v11  ;;  %v106_v14 = vadd.f32 %v120_v6, %v105_v12 }
  0xd7   :  { %v143_v15 = vpop.f32.mrf.mxu0 }
  0xd8   :  { %v112_v16 = vadd.f32 %v110_v13, %v106_v14 }
  0xda   :  { %115 = vst.msk [vmem:[%s212_s4 + $0x8] sm:$0xff] %vm113_vm2, %v112_v16 }

</bundles_post_ra>
